<compile_context>
chip_gen: v6e
topology: v6e:2x2x1
jax: 0.10.0
libtpu: 0.0.40
codegen_flags: <defaults>
</compile_context>

<pallas_src>
import jax
import jax.numpy as jnp
from jax.experimental import pallas as pl
from jax.experimental.pallas import tpu as pltpu


def _lisht_kernel(x_ref, o_ref):
    x = x_ref[...]
    # tanh -> EUP (free slot), multiply -> VPU; kernel remains HBM-bound.
    o_ref[...] = x * jnp.tanh(x)


# ~2 MiB per block: large enough to amortize the ~0.35 us/step grid overhead,
# small enough that the 2x double-buffered (in + out) footprint fits the
# default scoped-VMEM limit on every TPU generation.
_TARGET_BLOCK_BYTES = 2 * 1024 * 1024


def lisht(x: jax.Array) -> jax.Array:
    """LiSHT activation: x * tanh(x), elementwise. Floating dtypes only."""
    if not jnp.issubdtype(x.dtype, jnp.floating):
        raise TypeError(f"lisht expects a floating dtype, got {x.dtype}")

    orig_shape = x.shape
    dtype = x.dtype
    total = x.size
    if total == 0:
        return x

    # Widest lane dim that divides the flat length -> lane-dense, unmasked
    # stores.  Fall back to padding the tiny tail only when total % 128 != 0.
    lanes = None
    for cand in (1024, 512, 256, 128):
        if total % cand == 0:
            lanes = cand
            break

    x_flat = x.reshape(-1)
    padded_total = total
    if lanes is None:
        lanes = 128
        padded_total = ((total + lanes - 1) // lanes) * lanes
        x_flat = jnp.pad(x_flat, (0, padded_total - total))

    rows = padded_total // lanes
    x2d = x_flat.reshape(rows, lanes)

    # Block sizing: ~_TARGET_BLOCK_BYTES per block, block_rows a multiple of 8
    # (sublane tiling).  Small inputs use a single full-array block (always a
    # legal block shape, even if rows % 8 != 0).
    itemsize = jnp.dtype(dtype).itemsize
    block_rows = max(8, (_TARGET_BLOCK_BYTES // (lanes * itemsize)) // 8 * 8)
    if rows <= block_rows:
        block_rows = rows

    grid = (pl.cdiv(rows, block_rows),)  # partial last block is masked

    out2d = pl.pallas_call(
        _lisht_kernel,
        out_shape=jax.ShapeDtypeStruct((rows, lanes), dtype),
        grid_spec=pltpu.PrefetchScalarGridSpec(
            num_scalar_prefetch=0,
            grid=grid,
            in_specs=[pl.BlockSpec((block_rows, lanes), lambda i: (i, 0))],
            out_specs=pl.BlockSpec((block_rows, lanes), lambda i: (i, 0)),
        ),
        compiler_params=pltpu.CompilerParams(
            dimension_semantics=("parallel",),  # dual-TC sharding on v7x
        ),
    )(x2d)

    out_flat = out2d.reshape(-1)
    if padded_total != total:
        out_flat = out_flat[:total]
    return out_flat.reshape(orig_shape)


if __name__ == "__main__":
    key = jax.random.PRNGKey(0)
    # NCHW input, matching typical PyTorch usage of the module.
    x = jax.random.normal(key, (2, 4, 16, 16), dtype=jnp.float32)

    # jit so the reshape plumbing fuses with the pallas_call in one program.
    lisht_jit = jax.jit(lisht)
    y = lisht_jit(x)
    jax.block_until_ready(y)

    # Correctness check against the pure-JAX reference of the PyTorch module.
    y_ref = x * jnp.tanh(x)
    assert y.shape == x.shape and y.dtype == x.dtype
    assert jnp.allclose(y, y_ref, atol=1e-5, rtol=1e-5)

    print("KERNEL_OK")
</pallas_src>

<mosaic_0001>
module attributes {stable_mosaic.version = 11 : i64} {
  func.func @_lisht_kernel(%arg0: i32, %arg1: memref<2x1024xf32, #tpu.memory_space<vmem>>, %arg2: memref<2x1024xf32, #tpu.memory_space<vmem>>) attributes {dimension_semantics = [#tpu.dimension_semantics<parallel>], iteration_bounds = array<i64: 1>, scalar_prefetch = 0 : i64, scratch_operands = 0 : i64, tpu.core_type = #tpu.core_type<tc>, window_params = [{transform_indices = @transform_0, window_bounds = array<i64: 2, 1024>}, {transform_indices = @transform_1, window_bounds = array<i64: 2, 1024>}]} {
    %c0 = arith.constant 0 : index
    %c0_0 = arith.constant 0 : index
    %0 = vector.load %arg1[%c0, %c0_0] : memref<2x1024xf32, #tpu.memory_space<vmem>>, vector<2x1024xf32>
    %1 = math.tanh %0 : vector<2x1024xf32>
    %2 = arith.mulf %0, %1 : vector<2x1024xf32>
    %c0_1 = arith.constant 0 : index
    %c0_2 = arith.constant 0 : index
    %3 = vector.load %arg2[%c0_1, %c0_2] : memref<2x1024xf32, #tpu.memory_space<vmem>>, vector<2x1024xf32>
    tpu.vector_store %arg2[%c0_1, %c0_2], %2 {strides = array<i32>} : memref<2x1024xf32, #tpu.memory_space<vmem>>, vector<2x1024xf32>,
    return
  }
  func.func @transform_0(%arg0: i32) -> (i32, i32) {
    %c0_i32 = arith.constant 0 : i32
    %c0_i32_0 = arith.constant 0 : i32
    return %arg0, %c0_i32 : i32, i32
  }
  func.func @transform_1(%arg0: i32) -> (i32, i32) {
    %c0_i32 = arith.constant 0 : i32
    %c0_i32_0 = arith.constant 0 : i32
    return %arg0, %c0_i32 : i32, i32
  }
}

</mosaic_0001>

<bundles_post_ra>
// kernel: lisht.1
= control target key start
LH: loop header
LB: loop body
LE: loop exit
PB: predicated region body
PF: predicated region fallthrough
CT: control target
= control target key end

     0   :  { %s46_s0 = inlined_call_operand.vmem [shape: f32[2,1024], index: 0, kind: input, shape index: {}]   ;;  %s47_s1 = inlined_call_operand.vmem [shape: f32[2,1024], index: 1, kind: output, shape index: {}]  }
   0x1   :  { %v8_v0 = vld [vmem:[%s46_s0] sm:$0xff]  ;;  %v9_v1 = vld [vmem:[%s46_s0 + $0x8] sm:$0xff] }
   0x2   :  { %20 = vtanh.f32 %v8_v0 }
   0x3   :  { %22 = vtanh.f32 %v9_v1 }
   0xf   :  { %v21_v2 = vpop.eup %20 }
  0x10   :  { %v23_v3 = vpop.eup %22  ;;  %v12_v4 = vmul.f32 %v21_v2, %v8_v0 }
  0x11   :  { %v13_v5 = vmul.f32 %v23_v3, %v9_v1 }
  0x12   :  { %14 = vst [vmem:[%s47_s1] sm:$0xff] %v12_v4 }
  0x13   :  { %15 = vst [vmem:[%s47_s1 + $0x8] sm:$0xff] %v13_v5 }

</bundles_post_ra>
